<compile_context>
chip_gen: v7x
topology: tpu7x:2x2x1
jax: 0.10.0
libtpu: 0.0.40
codegen_flags: <defaults>
</compile_context>

<pallas_src>
import functools
import math

import jax
import jax.numpy as jnp
from jax import lax
from jax.experimental import pallas as pl
from jax.experimental.pallas import tpu as pltpu

NEG_INF = float("-inf")


def _round_up(a, m):
    return ((a + m - 1) // m) * m


def _router_kernel(x_ref, w_ref, b_ref, noise_ref, router_ref, idx_ref,
                   *, top_k, num_experts, e_pad):
    x = x_ref[...]                                              # (Tt, n_embed)

    # one fused matmul for both linears: (Tt, 2*e_pad), f32 accumulation
    fused = jnp.dot(x, w_ref[...],
                    preferred_element_type=jnp.float32) + b_ref[...]
    logits = fused[:, :e_pad]                                   # (Tt, e_pad)
    noise_logits = fused[:, e_pad:]                             # (Tt, e_pad)

    # noise = randn_like(logits) * softplus(noise_logits)
    noisy = logits + noise_ref[...] * jax.nn.softplus(noise_logits)

    tt = noisy.shape[0]
    col = lax.broadcasted_iota(jnp.int32, (tt, e_pad), 1)
    valid = col < num_experts                                   # mask padded lanes
    noisy = jnp.where(valid, noisy, NEG_INF)

    # iterative top-k (k small & static): argmax, record, knock out, repeat.
    # indices are accumulated directly into a lane-dense (Tt, e_pad) slab
    # (column k holds the k-th index) -- no narrow concatenates / relayouts.
    vals = noisy
    selected = jnp.zeros((tt, e_pad), dtype=jnp.bool_)
    idx_slab = jnp.zeros((tt, e_pad), dtype=jnp.int32)
    for k in range(top_k):
        m = jnp.max(vals, axis=-1, keepdims=True)
        # first occurrence of the max (matches torch tie-breaking)
        idx = jnp.min(jnp.where(vals == m, col, e_pad), axis=-1, keepdims=True)
        sel = col == idx
        selected = selected | sel
        idx_slab = jnp.where(col == k, idx, idx_slab)
        vals = jnp.where(sel, NEG_INF, vals)

    idx_ref[...] = idx_slab

    # scatter(-inf outside top-k) followed by softmax over experts
    sparse = jnp.where(selected, noisy, NEG_INF)
    mx = jnp.max(sparse, axis=-1, keepdims=True)
    e = jnp.exp(sparse - mx)                                    # -inf -> 0 exactly
    denom = jnp.sum(e, axis=-1, keepdims=True)
    router_ref[...] = (e / denom).astype(router_ref.dtype)


def noisy_topk_router(x, w1, b1, w2, b2, noise_key, *, top_k,
                      tile_t=256, matmul_dtype=jnp.float32):
    """x: [B, S, n_embed] -> (router_output [B, S, E], indices [B, S, top_k]).

    w1/w2 are stored [n_embed, num_experts] (transposed vs. torch nn.Linear).
    tile_t: token rows per grid step (>=256 recommended on v6e/v7x, multiples
    of 128 on v5e); clamped & padded automatically for small T.
    matmul_dtype: set to jnp.bfloat16 if the surrounding model runs bf16
    activations (accumulation stays f32).
    """
    b, s, n_embed = x.shape
    num_experts = w1.shape[1]
    t = b * s
    e_pad = _round_up(num_experts, 128)              # lane-dense expert dim

    # clamp tile for small inputs, keep sublane (8) alignment, pad T
    tile_t = max(8, _round_up(min(tile_t, t), 8))
    t_pad = _round_up(t, tile_t)

    x2 = x.reshape(t, n_embed).astype(matmul_dtype)
    if t_pad != t:
        x2 = jnp.pad(x2, ((0, t_pad - t), (0, 0)))

    def pad_e(a):
        return jnp.pad(a, ((0, 0), (0, e_pad - num_experts)))

    # fuse the two linears: [n_embed, 2*e_pad] weights, [1, 2*e_pad] bias
    w_fused = jnp.concatenate(
        [pad_e(w1), pad_e(w2)], axis=1).astype(matmul_dtype)
    b_fused = jnp.concatenate(
        [pad_e(b1.reshape(1, -1)), pad_e(b2.reshape(1, -1))],
        axis=1).astype(jnp.float32)

    # torch.randn_like equivalent, generated host-side (lane-dense layout).
    noise = jax.random.normal(noise_key, (t_pad, e_pad), dtype=jnp.float32)

    grid = (t_pad // tile_t,)
    kernel = functools.partial(_router_kernel, top_k=top_k,
                               num_experts=num_experts, e_pad=e_pad)

    router, idx = pl.pallas_call(
        kernel,
        out_shape=(
            jax.ShapeDtypeStruct((t_pad, e_pad), jnp.float32),
            jax.ShapeDtypeStruct((t_pad, e_pad), jnp.int32),
        ),
        grid=grid,
        in_specs=[
            pl.BlockSpec((tile_t, n_embed), lambda i: (i, 0)),      # x tile
            pl.BlockSpec((n_embed, 2 * e_pad), lambda i: (0, 0)),   # fused W
            pl.BlockSpec((1, 2 * e_pad), lambda i: (0, 0)),         # fused b
            pl.BlockSpec((tile_t, e_pad), lambda i: (i, 0)),        # noise tile
        ],
        out_specs=(
            pl.BlockSpec((tile_t, e_pad), lambda i: (i, 0)),        # router slab
            pl.BlockSpec((tile_t, e_pad), lambda i: (i, 0)),        # indices slab
        ),
        compiler_params=pltpu.CompilerParams(
            dimension_semantics=("parallel",),        # megacore-shardable axis
            vmem_limit_bytes=64 * 1024 * 1024),
    )(x2, w_fused, b_fused, noise)

    router_out = router[:t, :num_experts].reshape(b, s, num_experts)
    indices = idx[:t, :top_k].reshape(b, s, top_k)
    return router_out, indices


def init_linear_params(key, in_features, out_features):
    """Deterministic nn.Linear-style init: U(-1/sqrt(fan_in), 1/sqrt(fan_in))."""
    kw, kb = jax.random.split(key)
    bound = 1.0 / math.sqrt(in_features)
    # stored as [in_features, out_features] (transposed vs. torch)
    w = jax.random.uniform(kw, (in_features, out_features),
                           minval=-bound, maxval=bound, dtype=jnp.float32)
    bvec = jax.random.uniform(kb, (out_features,),
                              minval=-bound, maxval=bound, dtype=jnp.float32)
    return w, bvec


if __name__ == "__main__":
    batch, seq, n_embed = 2, 8, 32
    num_experts, top_k = 8, 2

    root = jax.random.PRNGKey(0)
    kx, k1, k2, kn = jax.random.split(root, 4)

    x = jax.random.normal(kx, (batch, seq, n_embed), dtype=jnp.float32)
    w1, b1 = init_linear_params(k1, n_embed, num_experts)   # topkroute_linear
    w2, b2 = init_linear_params(k2, n_embed, num_experts)   # noise_linear

    router_output, indices = noisy_topk_router(
        x, w1, b1, w2, b2, kn, top_k=top_k)
    jax.block_until_ready((router_output, indices))

    # sanity: softmax over experts sums to 1, exactly top_k nonzeros per token,
    # indices valid and consistent with the nonzero routing weights
    assert router_output.shape == (batch, seq, num_experts)
    assert indices.shape == (batch, seq, top_k)
    assert bool(jnp.allclose(router_output.sum(-1), 1.0, atol=1e-5))
    assert bool(jnp.all((router_output > 0).sum(-1) == top_k))
    assert bool(jnp.all((indices >= 0) & (indices < num_experts)))
    gathered = jnp.take_along_axis(router_output, indices, axis=-1)
    assert bool(jnp.all(gathered > 0))

    print("KERNEL_OK")
</pallas_src>

<mosaic_0001>
module attributes {stable_mosaic.version = 11 : i64} {
  func.func @_router_kernel(%arg0: i32, %arg1: memref<16x32xf32, #tpu.memory_space<vmem>>, %arg2: memref<32x256xf32, #tpu.memory_space<vmem>>, %arg3: memref<1x256xf32, #tpu.memory_space<vmem>>, %arg4: memref<16x128xf32, #tpu.memory_space<vmem>>, %arg5: memref<16x128xf32, #tpu.memory_space<vmem>>, %arg6: memref<16x128xi32, #tpu.memory_space<vmem>>) attributes {dimension_semantics = [#tpu.dimension_semantics<parallel>], iteration_bounds = array<i64: 1>, scalar_prefetch = 0 : i64, scratch_operands = 0 : i64, tpu.core_type = #tpu.core_type<tc>, window_params = [{transform_indices = @transform_0, window_bounds = array<i64: 16, 32>}, {pipeline_mode = #tpu.pipeline_mode<synchronous>, transform_indices = @transform_1, window_bounds = array<i64: 32, 256>}, {pipeline_mode = #tpu.pipeline_mode<synchronous>, transform_indices = @transform_2, window_bounds = array<i64: 1, 256>}, {transform_indices = @transform_3, window_bounds = array<i64: 16, 128>}, {transform_indices = @transform_4, window_bounds = array<i64: 16, 128>}, {transform_indices = @transform_5, window_bounds = array<i64: 16, 128>}]} {
    %c0 = arith.constant 0 : index
    %c0_0 = arith.constant 0 : index
    %0 = vector.load %arg1[%c0, %c0_0] : memref<16x32xf32, #tpu.memory_space<vmem>>, vector<16x32xf32>
    %c0_1 = arith.constant 0 : index
    %c0_2 = arith.constant 0 : index
    %1 = vector.load %arg2[%c0_1, %c0_2] : memref<32x256xf32, #tpu.memory_space<vmem>>, vector<32x256xf32>
    %cst = arith.constant dense<0.000000e+00> : vector<16x256xf32>
    %2 = tpu.matmul %0, %1, %cst {dimension_numbers = #tpu.dot_dimension_numbers<[1], [0], [0], [1], [0, 0, 1, 1], [], []>} : vector<16x32xf32>, vector<32x256xf32>, vector<16x256xf32> -> vector<16x256xf32>
    %c0_3 = arith.constant 0 : index
    %c0_4 = arith.constant 0 : index
    %3 = vector.load %arg3[%c0_3, %c0_4] : memref<1x256xf32, #tpu.memory_space<vmem>>, vector<1x256xf32>
    %4 = vector.broadcast %3 : vector<1x256xf32> to vector<16x256xf32>
    %5 = arith.addf %2, %4 : vector<16x256xf32>
    %6 = vector.extract_strided_slice %5 {offsets = [0, 0], sizes = [16, 128], strides = [1, 1]} : vector<16x256xf32> to vector<16x128xf32>
    %7 = vector.extract_strided_slice %5 {offsets = [0, 128], sizes = [16, 128], strides = [1, 1]} : vector<16x256xf32> to vector<16x128xf32>
    %c0_5 = arith.constant 0 : index
    %c0_6 = arith.constant 0 : index
    %8 = vector.load %arg4[%c0_5, %c0_6] : memref<16x128xf32, #tpu.memory_space<vmem>>, vector<16x128xf32>
    %cst_7 = arith.constant 0.000000e+00 : f32
    %9 = vector.broadcast %cst_7 : f32 to vector<16x128xf32>
    %10 = arith.maximumf %7, %9 : vector<16x128xf32>
    %11 = vector.broadcast %cst_7 : f32 to vector<16x128xf32>
    %12 = arith.subf %7, %11 : vector<16x128xf32>
    %13 = arith.cmpf one, %12, %12 : vector<16x128xf32>
    %14 = vector.broadcast %cst_7 : f32 to vector<16x128xf32>
    %15 = arith.addf %7, %14 : vector<16x128xf32>
    %16 = math.absf %12 : vector<16x128xf32>
    %cst_8 = arith.constant 0.000000e+00 : f32
    %17 = vector.broadcast %cst_8 : f32 to vector<16x128xf32>
    %18 = arith.subf %17, %16 : vector<16x128xf32>
    %19 = math.exp %18 : vector<16x128xf32>
    %20 = math.log1p %19 : vector<16x128xf32>
    %21 = arith.addf %10, %20 : vector<16x128xf32>
    %22 = arith.select %13, %15, %21 : vector<16x128xi1>, vector<16x128xf32>
    %23 = arith.mulf %8, %22 : vector<16x128xf32>
    %24 = arith.addf %6, %23 : vector<16x128xf32>
    %25 = tpu.iota {dimensions = array<i32: 1>} : vector<16x128xi32>
    %c8_i32 = arith.constant 8 : i32
    %26 = vector.broadcast %c8_i32 : i32 to vector<16x128xi32>
    %27 = arith.cmpi slt, %25, %26 : vector<16x128xi32>
    %cst_9 = arith.constant 0xFF800000 : f32
    %28 = vector.broadcast %cst_9 : f32 to vector<16x128xf32>
    %29 = arith.select %27, %24, %28 : vector<16x128xi1>, vector<16x128xf32>
    %false = arith.constant false
    %30 = vector.broadcast %false : i1 to vector<16x128xi1>
    %c0_i32 = arith.constant 0 : i32
    %31 = vector.broadcast %c0_i32 : i32 to vector<16x128xi32>
    %cst_10 = arith.constant dense<0xFF800000> : vector<16xf32>
    %32 = vector.multi_reduction <maximumf>, %29, %cst_10 [1] : vector<16x128xf32> to vector<16xf32>
    %33 = vector.shape_cast %32 : vector<16xf32> to vector<16x1xf32>
    %34 = vector.broadcast %33 : vector<16x1xf32> to vector<16x128xf32>
    %35 = arith.cmpf oeq, %29, %34 : vector<16x128xf32>
    %c128_i32 = arith.constant 128 : i32
    %36 = vector.broadcast %c128_i32 : i32 to vector<16x128xi32>
    %37 = arith.select %35, %25, %36 : vector<16x128xi1>, vector<16x128xi32>
    %cst_11 = arith.constant dense<2147483647> : vector<16xi32>
    %38 = vector.multi_reduction <minsi>, %37, %cst_11 [1] : vector<16x128xi32> to vector<16xi32>
    %39 = vector.shape_cast %38 : vector<16xi32> to vector<16x1xi32>
    %40 = vector.broadcast %39 : vector<16x1xi32> to vector<16x128xi32>
    %41 = arith.cmpi eq, %25, %40 : vector<16x128xi32>
    %42 = arith.ori %30, %41 : vector<16x128xi1>
    %c0_i32_12 = arith.constant 0 : i32
    %43 = vector.broadcast %c0_i32_12 : i32 to vector<16x128xi32>
    %44 = arith.cmpi eq, %25, %43 : vector<16x128xi32>
    %45 = vector.shape_cast %39 : vector<16x1xi32> to vector<16x1xi32>
    %46 = vector.broadcast %45 : vector<16x1xi32> to vector<16x128xi32>
    %47 = arith.select %44, %46, %31 : vector<16x128xi1>, vector<16x128xi32>
    %cst_13 = arith.constant 0xFF800000 : f32
    %48 = vector.broadcast %cst_13 : f32 to vector<16x128xf32>
    %49 = arith.select %41, %48, %29 : vector<16x128xi1>, vector<16x128xf32>
    %cst_14 = arith.constant dense<0xFF800000> : vector<16xf32>
    %50 = vector.multi_reduction <maximumf>, %49, %cst_14 [1] : vector<16x128xf32> to vector<16xf32>
    %51 = vector.shape_cast %50 : vector<16xf32> to vector<16x1xf32>
    %52 = vector.broadcast %51 : vector<16x1xf32> to vector<16x128xf32>
    %53 = arith.cmpf oeq, %49, %52 : vector<16x128xf32>
    %c128_i32_15 = arith.constant 128 : i32
    %54 = vector.broadcast %c128_i32_15 : i32 to vector<16x128xi32>
    %55 = arith.select %53, %25, %54 : vector<16x128xi1>, vector<16x128xi32>
    %cst_16 = arith.constant dense<2147483647> : vector<16xi32>
    %56 = vector.multi_reduction <minsi>, %55, %cst_16 [1] : vector<16x128xi32> to vector<16xi32>
    %57 = vector.shape_cast %56 : vector<16xi32> to vector<16x1xi32>
    %58 = vector.broadcast %57 : vector<16x1xi32> to vector<16x128xi32>
    %59 = arith.cmpi eq, %25, %58 : vector<16x128xi32>
    %60 = arith.ori %42, %59 : vector<16x128xi1>
    %c1_i32 = arith.constant 1 : i32
    %61 = vector.broadcast %c1_i32 : i32 to vector<16x128xi32>
    %62 = arith.cmpi eq, %25, %61 : vector<16x128xi32>
    %63 = vector.shape_cast %57 : vector<16x1xi32> to vector<16x1xi32>
    %64 = vector.broadcast %63 : vector<16x1xi32> to vector<16x128xi32>
    %65 = arith.select %62, %64, %47 : vector<16x128xi1>, vector<16x128xi32>
    %c0_17 = arith.constant 0 : index
    %c0_18 = arith.constant 0 : index
    %66 = vector.load %arg6[%c0_17, %c0_18] : memref<16x128xi32, #tpu.memory_space<vmem>>, vector<16x128xi32>
    tpu.vector_store %arg6[%c0_17, %c0_18], %65 {strides = array<i32>} : memref<16x128xi32, #tpu.memory_space<vmem>>, vector<16x128xi32>,
    %cst_19 = arith.constant 0xFF800000 : f32
    %67 = vector.broadcast %cst_19 : f32 to vector<16x128xf32>
    %68 = arith.select %60, %29, %67 : vector<16x128xi1>, vector<16x128xf32>
    %cst_20 = arith.constant dense<0xFF800000> : vector<16xf32>
    %69 = vector.multi_reduction <maximumf>, %68, %cst_20 [1] : vector<16x128xf32> to vector<16xf32>
    %70 = vector.shape_cast %69 : vector<16xf32> to vector<16x1xf32>
    %71 = vector.broadcast %70 : vector<16x1xf32> to vector<16x128xf32>
    %72 = arith.subf %68, %71 : vector<16x128xf32>
    %73 = math.exp %72 : vector<16x128xf32>
    %cst_21 = arith.constant dense<0.000000e+00> : vector<16xf32>
    %74 = vector.multi_reduction <add>, %73, %cst_21 [1] : vector<16x128xf32> to vector<16xf32>
    %75 = vector.shape_cast %74 : vector<16xf32> to vector<16x1xf32>
    %76 = vector.broadcast %75 : vector<16x1xf32> to vector<16x128xf32>
    %77 = arith.divf %73, %76 : vector<16x128xf32>
    %c0_22 = arith.constant 0 : index
    %c0_23 = arith.constant 0 : index
    %78 = vector.load %arg5[%c0_22, %c0_23] : memref<16x128xf32, #tpu.memory_space<vmem>>, vector<16x128xf32>
    tpu.vector_store %arg5[%c0_22, %c0_23], %77 {strides = array<i32>} : memref<16x128xf32, #tpu.memory_space<vmem>>, vector<16x128xf32>,
    return
  }
  func.func @transform_0(%arg0: i32) -> (i32, i32) {
    %c0_i32 = arith.constant 0 : i32
    %c0_i32_0 = arith.constant 0 : i32
    return %arg0, %c0_i32 : i32, i32
  }
  func.func @transform_1(%arg0: i32) -> (i32, i32) {
    %c0_i32 = arith.constant 0 : i32
    %c0_i32_0 = arith.constant 0 : i32
    %c0_i32_1 = arith.constant 0 : i32
    return %c0_i32, %c0_i32_0 : i32, i32
  }
  func.func @transform_2(%arg0: i32) -> (i32, i32) {
    %c0_i32 = arith.constant 0 : i32
    %c0_i32_0 = arith.constant 0 : i32
    %c0_i32_1 = arith.constant 0 : i32
    return %c0_i32, %c0_i32_0 : i32, i32
  }
  func.func @transform_3(%arg0: i32) -> (i32, i32) {
    %c0_i32 = arith.constant 0 : i32
    %c0_i32_0 = arith.constant 0 : i32
    return %arg0, %c0_i32 : i32, i32
  }
  func.func @transform_4(%arg0: i32) -> (i32, i32) {
    %c0_i32 = arith.constant 0 : i32
    %c0_i32_0 = arith.constant 0 : i32
    return %arg0, %c0_i32 : i32, i32
  }
  func.func @transform_5(%arg0: i32) -> (i32, i32) {
    %c0_i32 = arith.constant 0 : i32
    %c0_i32_0 = arith.constant 0 : i32
    return %arg0, %c0_i32 : i32, i32
  }
}

</mosaic_0001>

<bundles_post_ra>
// kernel: tpu_custom_call.1
= control target key start
LH: loop header
LB: loop body
LE: loop exit
PB: predicated region body
PF: predicated region fallthrough
CT: control target
= control target key end

     0   :  { %11 = vsyncpa [#allocation3], 0  ;;  %s724_s0 = inlined_call_operand.hbm [shape: f32[16,32], index: 0, kind: input, shape index: {}]   ;;  %s725_s1 = inlined_call_operand.hbm [shape: f32[32,256], index: 1, kind: input, shape index: {}]   ;;  %s726_s2 = inlined_call_operand.hbm [shape: f32[1,256], index: 2, kind: input, shape index: {}]   ;;  %s727_s3 = inlined_call_operand.hbm [shape: f32[16,128], index: 3, kind: input, shape index: {}]   ;;  %s728_s4 = inlined_call_operand.hbm [shape: f32[16,128], index: 4, kind: output, shape index: {0}]   ;;  %s729_s5 = inlined_call_operand.hbm [shape: s32[16,128], index: 5, kind: output, shape index: {1}]  }
   0x1   :  { %12 = vsyncpa [#allocation6], 0 }
   0x2   :  { %13 = vsyncpa [#allocation9], 0 }
   0x3   :  { %14 = vsyncpa [#allocation4], 0 }
   0x4   :  { %15 = vsyncpa [#allocation12], 0  ;;  %s555_s18 = smov [#allocation5]   ;;  %s413_s22 = scalar_lea.hbm %s725_s1, 1024 }
   0x5   :  { %s33_s19 = sshll.u32 %s555_s18, 4  ;;  %p414_p0 = scmp.ne.s32.totalorder %s725_s1, %s413_s22  ;;  %s34_s19 = int_to_ptr.vmem [resolvable:$true] %s33_s19 }
   0x6   :  { %p417_p1 = scmp.lt.u32.totalorder %s413_s22, %s725_s1 }
   0x8   :  { %p419_p2 = pnand %p417_p1, %p414_p0 }
   0xa   :  { %422 = shalt.err (!%p419_p2)
}
   0xb   :  { %s423_s27 = scalar_lea.vmem %s34_s19, 1024  ;;  %p428_p4 = scmp.lt.s32.totalorder %s34_s19, %s34_s19 }
   0xc   :  { %p424_p3 = scmp.ne.s32.totalorder %s34_s19, %s423_s27  ;;  %p429_p5 = scmp.lt.s32.totalorder %s423_s27, %s423_s27 }
   0xe   :  { %p430_p6 = por %p429_p5, %p428_p4 }
  0x10   :  { %p431_p7 = pnand %p430_p6, %p424_p3 }
  0x12   :  { %434 = shalt.err (!%p431_p7)
}
  0x13   :  { %s556_s28 = smov 256   ;;  %s557_s29 = smov 16  }
  0x14   :  { %39 = dma.hbm_to_vmem [thread:$0]  %s725_s1, 1024, %s34_s19, [#allocation6], %s556_s28, %s556_s28, %s557_s29  }
  0x15   :  { %s558_s7 = smov [#allocation2]   ;;  %s435_s11 = scalar_lea.hbm %s724_s0, 256 }
  0x16   :  { %s21_s8 = sshll.u32 %s558_s7, 4  ;;  %p436_p8 = scmp.ne.s32.totalorder %s724_s0, %s435_s11  ;;  %s22_s8 = int_to_ptr.vmem [resolvable:$true] %s21_s8 }
  0x17   :  { %p439_p9 = scmp.lt.u32.totalorder %s435_s11, %s724_s0 }
  0x19   :  { %p441_p10 = pnand %p439_p9, %p436_p8 }
  0x1b   :  { %444 = shalt.err (!%p441_p10)
}
  0x1c   :  { %s445_s16 = scalar_lea.vmem %s22_s8, 256  ;;  %p450_p12 = scmp.lt.s32.totalorder %s22_s8, %s22_s8 }
  0x1d   :  { %p446_p11 = scmp.ne.s32.totalorder %s22_s8, %s445_s16  ;;  %p451_p13 = scmp.lt.s32.totalorder %s445_s16, %s445_s16 }
  0x1f   :  { %p452_p0 = por %p451_p13, %p450_p12 }
  0x21   :  { %p453_p1 = pnand %p452_p0, %p446_p11 }
  0x23   :  { %456 = shalt.err (!%p453_p1)
}
  0x24   :  { %s559_s1 = smov 128   ;;  %s560_s17 = smov 8  }
  0x25   :  { %27 = dma.hbm_to_vmem [thread:$0]  %s724_s0, 256, %s22_s8, [#allocation3], %s559_s1, %s559_s1, %s560_s17  }
  0x26   :  { %s561_s20 = smov [#allocation7]   ;;  %s562_s22 = smov [#allocation8]  }
  0x27   :  { %s46_s21 = sshll.u32 %s561_s20, 4  ;;  %s55_s23 = sshll.u32 %s562_s22, 4  ;;  %s47_s21 = int_to_ptr.vmem [resolvable:$true] %s46_s21  ;;  %s623_s23 = int_to_ptr.vmem [resolvable:$true] %s55_s23 }
  0x28   :  { %s457_s26 = scalar_lea.hbm %s726_s2, 32 }
  0x29   :  { %p458_p2 = scmp.ne.s32.totalorder %s726_s2, %s457_s26  ;;  %p461_p3 = scmp.lt.u32.totalorder %s457_s26, %s726_s2 }
  0x2b   :  { %p463_p4 = pnand %p461_p3, %p458_p2 }
  0x2d   :  { %466 = shalt.err (!%p463_p4)
}
  0x2e   :  { %s467_s0 = scalar_lea.vmem %s47_s21, 32  ;;  %p472_p6 = scmp.lt.s32.totalorder %s47_s21, %s47_s21 }
  0x2f   :  { %p468_p5 = scmp.ne.s32.totalorder %s47_s21, %s467_s0  ;;  %p473_p7 = scmp.lt.s32.totalorder %s467_s0, %s467_s0 }
  0x31   :  { %p474_p8 = por %p473_p7, %p472_p6 }
  0x33   :  { %p475_p9 = pnand %p474_p8, %p468_p5 }
  0x35   :  { %478 = shalt.err (!%p475_p9)
}
  0x36   :  { %49 = dma.hbm_to_vmem [thread:$0]  %s726_s2, 32, %s47_s21, [#allocation6]  }
  0x37   :  { %s479_s10 = scalar_lea.hbm %s727_s3, 256 }
  0x38   :  { %p480_p10 = scmp.ne.s32.totalorder %s727_s3, %s479_s10  ;;  %p483_p11 = scmp.lt.u32.totalorder %s479_s10, %s727_s3 }
  0x3a   :  { %p485_p12 = pnand %p483_p11, %p480_p10 }
  0x3c   :  { %488 = shalt.err (!%p485_p12)
}
  0x3d   :  { %s489_s15 = scalar_lea.vmem %s623_s23, 256  ;;  %p494_p0 = scmp.lt.s32.totalorder %s623_s23, %s623_s23 }
  0x3e   :  { %p490_p13 = scmp.ne.s32.totalorder %s623_s23, %s489_s15  ;;  %p495_p1 = scmp.lt.s32.totalorder %s489_s15, %s489_s15 }
  0x40   :  { %p496_p2 = por %p495_p1, %p494_p0 }
  0x42   :  { %p497_p3 = pnand %p496_p2, %p490_p13 }
  0x44   :  { %500 = shalt.err (!%p497_p3)
}
  0x45   :  { %61 = dma.hbm_to_vmem [thread:$0]  %s727_s3, 256, %s623_s23, [#allocation9], %s559_s1, %s559_s1, %s560_s17  }
  0x46   :  { %545 = dma.done.wait [#allocation3], 256  }
  0x47   :  { %546 = vsyncadd [#allocation3], 4294967040 }
  0x48   :  { %547 = dma.done.wait [#allocation6], 1056  }
  0x49   :  { %548 = vsyncadd [#allocation6], 4294966240 }
  0x4a   :  { %549 = dma.done.wait [#allocation9], 256  }
  0x4b   :  { %550 = vsyncadd [#allocation9], 4294967040  ;;  %v563_v0 = vmov 0.0   ;;  %v77_v1 = vld [vmem:[#allocation5 + $0x8] sm:$0xff]  ;;  %v79_v2 = vld [vmem:[#allocation5 + $0x18] sm:$0xff]  ;;  %vm96_vm0 = vcmask 261120   ;;  %v86_v15 = vlaneseq }
  0x4c   :  { %167 = vmatprep.mubr.f32.mxu0 %v563_v0  ;;  %173 = vmatprep.mubr.f32.mxu1 %v563_v0  ;;  %v76_v3 = vld [vmem:[#allocation5] sm:$0xff]  ;;  %v374_v4 = vpack.c.bf16 %v79_v2, %v77_v1  ;;  %v78_v5 = vld [vmem:[#allocation5 + $0x10] sm:$0xff]  ;;  %v81_v6 = vld [vmem:[#allocation5 + $0x28] sm:$0xff]  ;;  %s564_s3 = smov [#allocation11]  }
  0x4d   :  { %v83_v7 = vld [vmem:[#allocation5 + $0x38] sm:$0xff]  ;;  %v376_v8 = vpack.c.bf16 %v78_v5, %v76_v3  ;;  %v80_v10 = vld [vmem:[#allocation5 + $0x20] sm:$0xff]  ;;  %v82_v11 = vld [vmem:[#allocation5 + $0x30] sm:$0xff]  ;;  %v87_v16 = vshrl.u32 %v86_v15, 7  ;;  %v657_v53 = vand.u32 127, %v86_v15  ;;  %s354_s18 = sshll.u32 %s564_s3, 4  ;;  %s355_s18 = int_to_ptr.vmem [resolvable:$true] %s354_s18 }
  0x4e   :  { %v378_v9 = vpack.c.bf16 %v83_v7, %v81_v6  ;;  %375 = vmatprep.subr.bf16.mxu0 %v374_v4  ;;  %382 = vmatprep.subr.bf16.mxu1 %v374_v4  ;;  %v380_v12 = vpack.c.bf16 %v82_v11, %v80_v10  ;;  %v74_v13 = vld [vmem:[#allocation2] sm:$0xff]  ;;  %v75_v14 = vld [vmem:[#allocation2 + $0x8] sm:$0xff]  ;;  %v84_v18 = vld [vmem:[#allocation7] sm:$0x3]  ;;  %s501_s19 = scalar_lea.vmem %s355_s18, 256  ;;  %p506_p5 = scmp.lt.s32.totalorder %s355_s18, %s355_s18 }
  0x4f   :  { %377 = vmatpush1.bf16.msra.mxu0 %v376_v8  ;;  %384 = vmatpush1.bf16.msra.mxu1 %v376_v8  ;;  %v92_v17 = vsub.s32 1, %v87_v16  ;;  %v88_v41 = vsub.s32 0, %v87_v16  ;;  %v180_v56 = vld [vmem:[#allocation8] sm:$0xff]  ;;  %v181_v58 = vld [vmem:[#allocation8 + $0x8] sm:$0xff]  ;;  %vm224_vm5 = vcmp.lt.s32.totalorder %v657_v53, 8  ;;  %p502_p4 = scmp.ne.s32.totalorder %s355_s18, %s501_s19  ;;  %p507_p6 = scmp.lt.s32.totalorder %s501_s19, %s501_s19 }
  0x50   :  { %379 = vmatprep.subr.bf16.mxu0 %v378_v9  ;;  %383 = vmatprep.subr.bf16.mxu1 %v378_v9 }
  0x51   :  { %v93_v19 = vrot.slane %v84_v18, %v92_v17  ;;  %v89_v50 = vrot.slane %v84_v18, %v88_v41  ;;  %p508_p7 = por %p507_p6, %p506_p5 }
  0x53   :  { %381 = vmatpush1.bf16.msra.mxu0 %v380_v12  ;;  %385 = vmatpush1.bf16.msra.mxu1 %v380_v12  ;;  %p509_p8 = pnand %p508_p7, %p502_p4 }
  0x56   :  { %372 = vmatmul.mubr.msk.f32.vlgmr.msra.gmra.mrb[0].mxu0 %vm96_vm0, %v74_v13  ;;  %373 = vmatmul.mubr.msk.f32.vlgmr.msra.gmra.mrb[0].mxu1 %vm96_vm0, %v75_v14  ;;  %vm265_vm0 = vcmp.eq.s32.totalorder %v657_v53, 0 }
 0x129   :  { %v169_v20 = vpop.f32.mrb[0].mxu0  ;;  %v175_v21 = vpop.f32.mrb[0].mxu1 }
 0x12a   :  { %v171_v22 = vpop.f32.mrb[1].mxu0  ;;  %v177_v23 = vpop.f32.mrb[1].mxu1  ;;  %v170_v60 = vadd.f32 %v169_v20, %v89_v50  ;;  %v176_v63 = vadd.f32 %v175_v21, %v89_v50 }
 0x12b   :  { %v172_v24 = vadd.f32 %v171_v22, %v93_v19  ;;  %v178_v25 = vadd.f32 %v177_v23, %v93_v19 }
 0x12d   :  { %v188_v26 = vand.u32 2147483647, %v172_v24  ;;  %v189_v27 = vand.u32 2147483647, %v178_v25  ;;  %v182_v47 = vmax.f32 %v172_v24, 0.0  ;;  %v183_v52 = vmax.f32 %v178_v25, 0.0 }
 0x12e   :  { %vm184_vm3 = vcmp.ne.f32.partialorder %v172_v24, %v172_v24  ;;  %vm185_vm4 = vcmp.ne.f32.partialorder %v178_v25, %v178_v25 }
 0x12f   :  { %v190_v28 = vsub.f32 0.0, %v188_v26  ;;  %v191_v29 = vsub.f32 0.0, %v189_v27 }
 0x131   :  { %v192_v30 = vmul.f32 1.442695, %v190_v28  ;;  %v194_v31 = vmul.f32 1.442695, %v191_v29 }
 0x133   :  { %397 = vpow2.f32 %v192_v30 }
 0x134   :  { %399 = vpow2.f32 %v194_v31 }
 0x13d   :  { %v398_v32 = vpop.eup %397 }
 0x13e   :  { %v400_v33 = vpop.eup %399  ;;  %v196_v34 = vadd.f32 1.0, %v398_v32  ;;  %v199_v36 = vmul.f32 -0.5, %v398_v32  ;;  %v202_v39 = vand.u32 2147483647, %v398_v32 }
 0x13f   :  { %v205_v35 = vadd.f32 1.0, %v400_v33  ;;  %v208_v37 = vmul.f32 -0.5, %v400_v33  ;;  %v211_v42 = vand.u32 2147483647, %v400_v33 }
 0x140   :  { %401 = vlog2.f32 %v196_v34  ;;  %v200_v38 = vadd.f32 1.0, %v199_v36  ;;  %vm203_vm1 = vcmp.lt.f32.partialorder %v202_v39, 0.0004427343 }
 0x141   :  { %403 = vlog2.f32 %v205_v35  ;;  %v209_v40 = vadd.f32 1.0, %v208_v37  ;;  %vm212_vm2 = vcmp.lt.f32.partialorder %v211_v42, 0.0004427343 }
 0x142   :  { %v201_v46 = vmul.f32 %v398_v32, %v200_v38 }
 0x143   :  { %v210_v49 = vmul.f32 %v400_v33, %v209_v40 }
 0x14a   :  { %v402_v43 = vpop.eup %401 }
 0x14b   :  { %v404_v44 = vpop.eup %403  ;;  %v198_v45 = vmul.f32 0.6931472, %v402_v43 }
 0x14c   :  { %v207_v48 = vmul.f32 0.6931472, %v404_v44 }
 0x14d   :  { %v204_v51 = vsel %vm203_vm1, %v201_v46, %v198_v45  ;;  %vm310_vm1 = vcmp.eq.s32.totalorder %v657_v53, 1 }
 0x14e   :  { %v214_v54 = vadd.f32 %v204_v51, %v182_v47  ;;  %v213_v55 = vsel %vm212_vm2, %v210_v49, %v207_v48 }
 0x14f   :  { %v215_v57 = vadd.f32 %v213_v55, %v183_v52 }
 0x150   :  { %v216_v59 = vsel %vm184_vm3, %v172_v24, %v214_v54 }
 0x151   :  { %v218_v61 = vmul.f32 %v216_v59, %v180_v56  ;;  %v217_v62 = vsel %vm185_vm4, %v178_v25, %v215_v57 }
 0x152   :  { %v219_v0 = vmul.f32 %v217_v62, %v181_v58 }
 0x153   :  { %v220_v1 = vadd.f32 %v218_v61, %v170_v60 }
 0x154   :  { %v221_v2 = vadd.f32 %v219_v0, %v176_v63 }
 0x155   :  { %v660_v3 = vsel %vm224_vm5, %v220_v1, -inf }
 0x156   :  { %227 = vmax.xlane.f32.xlu0 %v660_v3  ;;  %v663_v4 = vsel %vm224_vm5, %v221_v2, -inf }
 0x15a   :  { %229 = vmax.xlane.f32.xlu0 %v663_v4 }
 0x1e3   :  { %v228_v5 = vpop.xlane.xlu0 %227 }
 0x1e4   :  { %vm231_vm6 = vcmp.eq.f32.partialorder %v660_v3, %v228_v5 }
 0x1e5   :  { %v233_v6 = vsel %vm231_vm6, %v657_v53, 128 }
 0x1e6   :  { %v236_v7 = vshra.s32 %v233_v6, 16  ;;  %v235_v13 = vand.u32 65535, %v233_v6 }
 0x1e7   :  { %v230_v8 = vpop.xlane.xlu0 %229 }
 0x1e8   :  { %vm232_vm7 = vcmp.eq.f32.partialorder %v663_v4, %v230_v8  ;;  %v238_v9 = vcvt.s32.f32 %v236_v7  ;;  %v237_v16 = vcvt.s32.f32 %v235_v13 }
 0x1e9   :  { %v234_v10 = vsel %vm232_vm7, %v657_v53, 128 }
 0x1ea   :  { %239 = vmin.xlane.f32.xlu1 %v238_v9  ;;  %v250_v11 = vshra.s32 %v234_v10, 16  ;;  %v249_v14 = vand.u32 65535, %v234_v10 }
 0x1ec   :  { %v252_v12 = vcvt.s32.f32 %v250_v11  ;;  %v251_v19 = vcvt.s32.f32 %v249_v14 }
 0x1ee   :  { %253 = vmin.xlane.f32.xlu1 %v252_v12 }
 0x277   :  { %v240_v15 = vpop.xlane.xlu1 %239 }
 0x278   :  { %vm241_vm8 = vcmp.eq.f32.partialorder %v238_v9, %v240_v15  ;;  %v246_v21 = vcvt.f32.s32 %v240_v15 }
 0x279   :  { %v242_v17 = vsel %vm241_vm8, %v237_v16, inf }
 0x27a   :  { %243 = vmin.xlane.f32.xlu0 %v242_v17  ;;  %v247_v23 = vshll.u32 %v246_v21, 16 }
 0x27b   :  { %v254_v18 = vpop.xlane.xlu1 %253 }
 0x27c   :  { %vm255_vm9 = vcmp.eq.f32.partialorder %v252_v12, %v254_v18  ;;  %v260_v24 = vcvt.f32.s32 %v254_v18 }
 0x27d   :  { %v256_v20 = vsel %vm255_vm9, %v251_v19, inf }
 0x27e   :  { %257 = vmin.xlane.f32.xlu1 %v256_v20  ;;  %v261_v28 = vshll.u32 %v260_v24, 16 }
 0x307   :  { %v244_v22 = vpop.xlane.xlu0 %243 }
 0x308   :  { %v245_v25 = vcvt.f32.s32 %v244_v22 }
 0x30a   :  { %v248_v26 = vadd.s32 %v247_v23, %v245_v25 }
 0x30b   :  { %v258_v27 = vpop.xlane.xlu1 %257 }
 0x30c   :  { %v259_v29 = vcvt.f32.s32 %v258_v27  ;;  %vm263_vm10 = vcmp.eq.s32.totalorder %v657_v53, %v248_v26  ;;  %v266_v56 = vsel %vm265_vm0, %v248_v26, 0 }
 0x30d   :  { %v268_v30 = vsel %vm263_vm10, -inf, %v660_v3 }
 0x30e   :  { %v262_v31 = vadd.s32 %v261_v28, %v259_v29  ;;  %270 = vmax.xlane.f32.xlu0 %v268_v30 }
 0x310   :  { %vm264_vm11 = vcmp.eq.s32.totalorder %v657_v53, %v262_v31  ;;  %v267_v63 = vsel %vm265_vm0, %v262_v31, 0 }
 0x311   :  { %v269_v32 = vsel %vm264_vm11, -inf, %v663_v4 }
 0x312   :  { %272 = vmax.xlane.f32.xlu1 %v269_v32 }
 0x39b   :  { %v271_v33 = vpop.xlane.xlu0 %270 }
 0x39c   :  { %vm274_vm12 = vcmp.eq.f32.partialorder %v268_v30, %v271_v33 }
 0x39d   :  { %v276_v34 = vsel %vm274_vm12, %v657_v53, 128 }
 0x39e   :  { %v279_v35 = vshra.s32 %v276_v34, 16  ;;  %v278_v41 = vand.u32 65535, %v276_v34 }
 0x39f   :  { %v273_v36 = vpop.xlane.xlu1 %272 }
 0x3a0   :  { %vm275_vm13 = vcmp.eq.f32.partialorder %v269_v32, %v273_v36  ;;  %v281_v37 = vcvt.s32.f32 %v279_v35  ;;  %v280_v44 = vcvt.s32.f32 %v278_v41 }
 0x3a1   :  { %v277_v38 = vsel %vm275_vm13, %v657_v53, 128 }
 0x3a2   :  { %282 = vmin.xlane.f32.xlu0 %v281_v37  ;;  %v293_v39 = vshra.s32 %v277_v38, 16  ;;  %v292_v42 = vand.u32 65535, %v277_v38 }
 0x3a4   :  { %v295_v40 = vcvt.s32.f32 %v293_v39  ;;  %v294_v47 = vcvt.s32.f32 %v292_v42 }
 0x3a6   :  { %296 = vmin.xlane.f32.xlu1 %v295_v40 }
 0x42f   :  { %v283_v43 = vpop.xlane.xlu0 %282 }
 0x430   :  { %vm284_vm14 = vcmp.eq.f32.partialorder %v281_v37, %v283_v43  ;;  %v289_v49 = vcvt.f32.s32 %v283_v43 }
 0x431   :  { %v285_v45 = vsel %vm284_vm14, %v280_v44, inf }
 0x432   :  { %286 = vmin.xlane.f32.xlu0 %v285_v45  ;;  %v290_v51 = vshll.u32 %v289_v49, 16 }
 0x433   :  { %v297_v46 = vpop.xlane.xlu1 %296 }
 0x434   :  { %vm298_vm15 = vcmp.eq.f32.partialorder %v295_v40, %v297_v46  ;;  %v303_v52 = vcvt.f32.s32 %v297_v46 }
 0x435   :  { %v299_v48 = vsel %vm298_vm15, %v294_v47, inf }
 0x436   :  { %300 = vmin.xlane.f32.xlu1 %v299_v48  ;;  %v304_v58 = vshll.u32 %v303_v52, 16 }
 0x4bf   :  { %v287_v50 = vpop.xlane.xlu0 %286 }
 0x4c0   :  { %v288_v54 = vcvt.f32.s32 %v287_v50 }
 0x4c2   :  { %v291_v55 = vadd.s32 %v290_v51, %v288_v54 }
 0x4c3   :  { %v301_v57 = vpop.xlane.xlu1 %300 }
 0x4c4   :  { %v302_v59 = vcvt.f32.s32 %v301_v57  ;;  %vm306_vm2 = vcmp.eq.s32.totalorder %v657_v53, %v291_v55  ;;  %v311_v60 = vsel %vm310_vm1, %v291_v55, %v266_v56 }
 0x4c5   :  { %vm308_vm3 = vmor %vm263_vm10, %vm306_vm2  ;;  %313 = vst [vmem:[#allocation11] sm:$0xff] %v311_v60 }
 0x4c6   :  { %v305_v61 = vadd.s32 %v304_v58, %v302_v59  ;;  %v315_v62 = vsel %vm308_vm3, %v660_v3, -inf }
 0x4c7   :  { %317 = vmax.xlane.f32.xlu0 %v315_v62 }
 0x4c8   :  { %vm307_vm4 = vcmp.eq.s32.totalorder %v657_v53, %v305_v61  ;;  %v312_v0 = vsel %vm310_vm1, %v305_v61, %v267_v63 }
 0x4c9   :  { %vm309_vm5 = vmor %vm264_vm11, %vm307_vm4  ;;  %314 = vst [vmem:[#allocation11 + $0x8] sm:$0xff] %v312_v0 }
 0x4ca   :  { %v316_v1 = vsel %vm309_vm5, %v663_v4, -inf }
 0x4cb   :  { %319 = vmax.xlane.f32.xlu1 %v316_v1 }
 0x554   :  { %v318_v2 = vpop.xlane.xlu0 %317 }
 0x555   :  { %v321_v5 = vsub.f32 %v315_v62, %v318_v2 }
 0x557   :  { %v323_v6 = vmul.f32 1.442695, %v321_v5 }
 0x558   :  { %v320_v7 = vpop.xlane.xlu1 %319 }
 0x559   :  { %405 = vpow2.f32 %v323_v6  ;;  %v322_v3 = vsub.f32 %v316_v1, %v320_v7 }
 0x55b   :  { %v325_v8 = vmul.f32 1.442695, %v322_v3 }
 0x55d   :  { %407 = vpow2.f32 %v325_v8 }
 0x563   :  { %v406_v9 = vpop.eup %405 }
 0x564   :  { %327 = vadd.xlane.f32.xlu0 %v406_v9 }
 0x567   :  { %v408_v10 = vpop.eup %407 }
 0x568   :  { %329 = vadd.xlane.f32.xlu1 %v408_v10 }
 0x569   :  { %512 = shalt.err (!%p509_p8)
}
 0x56a   :  { %s513_s22 = scalar_lea.hbm %s729_s5, 256 }
 0x56b   :  { %p514_p9 = scmp.ne.s32.totalorder %s729_s5, %s513_s22  ;;  %p517_p10 = scmp.lt.u32.totalorder %s513_s22, %s729_s5 }
 0x56d   :  { %p519_p11 = pnand %p517_p10, %p514_p9 }
 0x56f   :  { %522 = shalt.err (!%p519_p11)
}
 0x570   :  { %360 = dma.vmem_to_hbm [thread:$0]  %s355_s18, 256, %s729_s5, [#allocation12], %s559_s1, %s559_s1, %s560_s17  }
 0x571   :  { %s565_s29 = smov [#allocation10]  }
 0x572   :  { %s342_s30 = sshll.u32 %s565_s29, 4  ;;  %s343_s30 = int_to_ptr.vmem [resolvable:$true] %s342_s30 }
 0x573   :  { %s523_s0 = scalar_lea.vmem %s343_s30, 256  ;;  %p528_p13 = scmp.lt.s32.totalorder %s343_s30, %s343_s30 }
 0x574   :  { %p524_p12 = scmp.ne.s32.totalorder %s343_s30, %s523_s0  ;;  %p529_p0 = scmp.lt.s32.totalorder %s523_s0, %s523_s0 }
 0x576   :  { %p530_p1 = por %p529_p0, %p528_p13 }
 0x578   :  { %p531_p2 = pnand %p530_p1, %p524_p12 }
 0x5f1   :  { %v328_v53 = vpop.xlane.xlu0 %327 }
 0x5f2   :  { %409 = vrcp.f32 %v328_v53 }
 0x5f5   :  { %v330_v4 = vpop.xlane.xlu1 %329 }
 0x5f6   :  { %411 = vrcp.f32 %v330_v4 }
 0x5fc   :  { %v410_v11 = vpop.eup %409 }
 0x5fd   :  { %v332_v12 = vmul.f32 %v410_v11, %v406_v9 }
 0x5ff   :  { %335 = vst [vmem:[#allocation10] sm:$0xff] %v332_v12 }
 0x600   :  { %v412_v13 = vpop.eup %411 }
 0x601   :  { %v334_v14 = vmul.f32 %v412_v13, %v408_v10 }
 0x603   :  { %336 = vst [vmem:[#allocation10 + $0x8] sm:$0xff] %v334_v14 }
 0x604   :  { %534 = shalt.err (!%p531_p2)
}
 0x605   :  { %s535_s7 = scalar_lea.hbm %s728_s4, 256 }
 0x606   :  { %p536_p3 = scmp.ne.s32.totalorder %s728_s4, %s535_s7  ;;  %p539_p4 = scmp.lt.u32.totalorder %s535_s7, %s728_s4 }
 0x608   :  { %p541_p5 = pnand %p539_p4, %p536_p3 }
 0x60a   :  { %544 = shalt.err (!%p541_p5)
}
 0x60b   :  { %348 = dma.vmem_to_hbm [thread:$0]  %s343_s30, 256, %s728_s4, [#allocation4], %s559_s1, %s559_s1, %s560_s17  }
 0x60c   :  { %551 = dma.done.wait [#allocation4], 256  }
 0x60d   :  { %552 = vsyncadd [#allocation4], 4294967040 }
 0x60e   :  { %553 = dma.done.wait [#allocation12], 256  }
 0x60f   :  { %554 = vsyncadd [#allocation12], 4294967040 }
 0x610   :  { %367 = vsyncpa [#allocation3], 1 }
 0x611   :  { %368 = vsyncpa [#allocation6], 1 }
 0x612   :  { %369 = vsyncpa [#allocation9], 1 }
 0x613   :  { %370 = vsyncpa [#allocation4], 1 }
 0x614   :  { %371 = vsyncpa [#allocation12], 1 }

</bundles_post_ra>
